<compile_context>
chip_gen: v7x
topology: tpu7x:2x2x1
jax: 0.10.0
libtpu: 0.0.40
codegen_flags: <defaults>
</compile_context>

<pallas_src>
import jax
import jax.numpy as jnp
import numpy as np
from jax.experimental import pallas as pl
from jax.experimental.pallas import tpu as pltpu


# ----------------------------------------------------------------------------
# Schedule glue (mirrors torch buffers in __init__; not on the kernel hot path)
# ----------------------------------------------------------------------------
def cosine_beta_schedule(n_steps, s=0.008):
    steps = n_steps + 1
    x = np.linspace(0, n_steps, steps)
    alphas_cumprod = np.cos(((x / n_steps) + s) / (1 + s) * np.pi * 0.5) ** 2
    alphas_cumprod = alphas_cumprod / alphas_cumprod[0]
    betas = 1.0 - (alphas_cumprod[1:] / alphas_cumprod[:-1])
    return np.clip(betas, 0.0, 0.999).astype(np.float32)


def _round_up(v, m):
    return ((v + m - 1) // m) * m


# ----------------------------------------------------------------------------
# Pallas kernel: the MLP denoiser net (the entirety of forward's compute)
# ----------------------------------------------------------------------------
def _net_kernel(x_ref, t_ref, emb_ref, w1_ref, w2_ref, b2_ref, w3_ref, b3_ref,
                out_ref):
    # x_ref  : (TM, D)  f32       t_ref  : (TM, 1)  i32
    # emb_ref: (Tp, H)  bf16 (b1 folded in, zero-padded rows beyond n_steps)
    # w1_ref : (D, H)   bf16      w2_ref : (H, H)   bf16    b2_ref : (1, H)  f32
    # w3_ref : (H, Dp)  bf16      b3_ref : (1, Dp)  f32     out_ref: (TM, Dp) f32
    tm = x_ref.shape[0]
    tp = emb_ref.shape[0]

    # Time-embedding gather on the MXU: onehot(t) @ Emb.  Keeps the gather out
    # of HBM entirely; the table is tiny (Tp x H bf16) and stays VMEM-resident.
    step_ids = jax.lax.broadcasted_iota(jnp.int32, (tm, tp), 1)
    onehot = (step_ids == t_ref[...]).astype(jnp.bfloat16)
    temb = jnp.dot(onehot, emb_ref[...], preferred_element_type=jnp.float32)

    h1 = jnp.dot(x_ref[...].astype(jnp.bfloat16), w1_ref[...],
                 preferred_element_type=jnp.float32)
    h1 = h1 + temb
    h1 = h1 * jax.nn.sigmoid(h1)                       # SiLU in f32 (EUP)

    h2 = jnp.dot(h1.astype(jnp.bfloat16), w2_ref[...],
                 preferred_element_type=jnp.float32)
    h2 = h2 + b2_ref[...]
    h2 = h2 * jax.nn.sigmoid(h2)

    out = jnp.dot(h2.astype(jnp.bfloat16), w3_ref[...],
                  preferred_element_type=jnp.float32)
    out_ref[...] = (out + b3_ref[...]).astype(out_ref.dtype)
    # TODO(synk): when used inside p_sample, fuse the per-step schedule scaling
    # (sqrt_recip_alphas / posterior mean coefs) into this epilogue so the
    # sampling loop avoids one elementwise XLA op + output round trip per step.


def _net_forward_pallas(xp, tp_idx, emb, w1, w2, b2, w3p, b3p, tm):
    """xp: (Bp, D) f32, tp_idx: (Bp, 1) i32.  Returns (Bp, Dp) f32."""
    Bp, D = xp.shape
    Tp, H = emb.shape
    Dp = w3p.shape[1]
    grid = (Bp // tm,)

    flops = 2 * Bp * (Tp * H + D * H + H * H + H * Dp)
    transcendentals = 2 * Bp * H
    bytes_accessed = (Bp * D * 4 + Bp * 4                 # x (f32), t (i32)
                      + Tp * H * 2                         # embedding table (bf16)
                      + (D * H + H * H + H * Dp) * 2       # bf16 weights
                      + (H + Dp) * 4                       # f32 biases
                      + Bp * Dp * 4)                       # f32 output

    return pl.pallas_call(
        _net_kernel,
        out_shape=jax.ShapeDtypeStruct((Bp, Dp), jnp.float32),
        grid=grid,
        in_specs=[
            pl.BlockSpec((tm, D), lambda i: (i, 0)),    # x tile (lane-sparse load OK)
            pl.BlockSpec((tm, 1), lambda i: (i, 0)),    # t indices
            pl.BlockSpec((Tp, H), lambda i: (0, 0)),    # embedding table (resident)
            pl.BlockSpec((D, H), lambda i: (0, 0)),     # W1 (resident)
            pl.BlockSpec((H, H), lambda i: (0, 0)),     # W2 (resident)
            pl.BlockSpec((1, H), lambda i: (0, 0)),     # b2
            pl.BlockSpec((H, Dp), lambda i: (0, 0)),    # W3 (resident)
            pl.BlockSpec((1, Dp), lambda i: (0, 0)),    # b3
        ],
        out_specs=pl.BlockSpec((tm, Dp), lambda i: (i, 0)),   # lane-dense store
        compiler_params=pltpu.CompilerParams(
            dimension_semantics=("parallel",)),
        cost_estimate=pl.CostEstimate(
            flops=flops, transcendentals=transcendentals,
            bytes_accessed=bytes_accessed),
    )(xp, tp_idx, emb, w1, w2, b2, w3p, b3p)


_TM_MAX = 512     # per-tile compute is tiny; big tiles amortize grid-step overhead


def _choose_tiling(B):
    """Return (tm, Bp).  Static under jit (depends only on the shape)."""
    if B <= 16:
        # Single tiny block: per-call dispatch dominates; don't add grid steps.
        # TODO(synk): callers should batch samples_per_step / timesteps to >=128
        # rows before hitting the kernel on this path.
        tm = _round_up(max(B, 1), 8)
        return tm, tm
    # >=2 (and even) grid steps so v7x can shard across both TensorCores;
    # each tile is at most _TM_MAX rows and a multiple of 16.
    n_blk = max(2, -(-B // _TM_MAX))
    if n_blk % 2:
        n_blk += 1
    tm = _round_up(-(-B // n_blk), 16)
    return tm, tm * n_blk


@jax.jit
def _forward_impl(x, t, emb, w1, w2, b2, w3p, b3p):
    """Pad (batch only) + kernel + un-pad, fused under one jit."""
    B, D = x.shape
    tm, Bp = _choose_tiling(B)
    xp = jnp.pad(x, ((0, Bp - B), (0, 0)))            # no-op when Bp == B
    tp_idx = jnp.pad(t, (0, Bp - B))[:, None].astype(jnp.int32)
    out_p = _net_forward_pallas(xp, tp_idx, emb, w1, w2, b2, w3p, b3p, tm)
    return out_p[:B, :D]


# ----------------------------------------------------------------------------
# DiffusionModel (JAX) — forward is the Pallas-backed net
# ----------------------------------------------------------------------------
class DiffusionModelPallas:
    def __init__(self, dim, n_steps, hidden=128, loss_type='simple',
                 mc_loss=True, var_type='learned', samples_per_step=1,
                 key=jax.random.PRNGKey(0)):
        self._dim = dim
        self._n_steps = n_steps
        self._hidden = hidden
        self._loss_type = loss_type
        self._mc_loss = mc_loss
        self._var_type = var_type
        self._samples_per_step = samples_per_step

        # --- diffusion schedule buffers (glue; mirrors the torch __init__) ---
        betas = jnp.asarray(cosine_beta_schedule(n_steps))
        alphas = 1.0 - betas
        self._betas = betas
        self._alphas = alphas
        self._log_alphas = jnp.log(alphas)
        self._sqrt_alphas = jnp.sqrt(alphas)
        self._sqrt_recip_alphas = 1.0 / jnp.sqrt(alphas)
        acp = jnp.cumprod(alphas, axis=0)
        self._alphas_cumprod = acp
        self._alphas_cumprod_prev = jnp.concatenate([jnp.ones((1,)), acp[:-1]])
        self._sqrt_alphas_cumprod = jnp.sqrt(acp)
        self._sqrt_one_minus_alphas_cumprod = jnp.sqrt(1.0 - acp)
        self._log_one_minus_alphas_cumprod = jnp.log(1.0 - acp)
        self._sqrt_recip_alphas_cumprod = 1.0 / jnp.sqrt(acp)
        self._sqrt_recipm1_alphas_cumprod = jnp.sqrt(1.0 / acp - 1.0)
        self._sqrt_recipm1_alphas_cumprod_custom = jnp.sqrt(1.0 / (1.0 - acp))
        self._posterior_variance = (
            betas * (1.0 - self._alphas_cumprod_prev) / (1.0 - acp))
        # positional clip args for portability across JAX versions
        self._posterior_log_variance_clipped = jnp.log(
            jnp.clip(self._posterior_variance, jnp.min(betas), None))
        self._posterior_mean_coef1 = (
            betas * jnp.sqrt(self._alphas_cumprod_prev) / (1.0 - acp))
        self._posterior_mean_coef2 = (
            (1.0 - self._alphas_cumprod_prev) * jnp.sqrt(alphas) / (1.0 - acp))

        # --- deterministic net parameters (bf16 weights, lane-dense output) ---
        ks = jax.random.split(key, 5)
        D, H, T = dim, hidden, n_steps
        Dp = _round_up(D, 128)
        Tp = _round_up(T, 128)
        self._dim_padded = Dp
        self._steps_padded = Tp

        t_emb_raw = jax.random.normal(ks[0], (T, H), jnp.float32) * 0.02
        w1 = jax.random.normal(ks[1], (D, H), jnp.float32) / np.sqrt(D)
        b1 = jnp.zeros((1, H), jnp.float32)
        w2 = jax.random.normal(ks[2], (H, H), jnp.float32) / np.sqrt(H)
        b2 = jnp.zeros((1, H), jnp.float32)
        w3 = jax.random.normal(ks[3], (H, D), jnp.float32) / np.sqrt(H)
        b3 = jnp.zeros((1, D), jnp.float32)

        # b1 folded into the time-embedding table; table padded to Tp rows so the
        # in-kernel one-hot gather matmul has an MXU-friendly contraction dim.
        self.t_emb_tbl = jnp.pad(t_emb_raw + b1,
                                 ((0, Tp - T), (0, 0))).astype(jnp.bfloat16)
        self.w1 = w1.astype(jnp.bfloat16)              # (D, H) — no lane padding
        self.w2 = w2.astype(jnp.bfloat16)
        self.b2 = b2
        # Output side stays lane-dense: W3 / b3 padded to Dp = 128 columns.
        self.w3p = jnp.pad(w3, ((0, 0), (0, Dp - D))).astype(jnp.bfloat16)
        self.b3p = jnp.pad(b3, ((0, 0), (0, Dp - D)))

    def forward(self, x, t):
        """Get mu_{t-1} given x_t.  Equivalent of torch forward: net(x, t)."""
        # TODO(synk): t is not range-checked; out-of-range t yields a zero time
        # embedding (one-hot selects nothing) instead of raising.
        x = jnp.atleast_2d(jnp.asarray(x, jnp.float32))
        t = jnp.atleast_1d(jnp.asarray(t, jnp.int32))
        return _forward_impl(x, t, self.t_emb_tbl, self.w1, self.w2, self.b2,
                             self.w3p, self.b3p)

    # pure-JAX reference for the same net (emulates the kernel's bf16 rounding)
    def _forward_ref(self, x, t):
        D = self._dim
        t = jnp.atleast_1d(t)
        temb = jnp.take(self.t_emb_tbl, t, axis=0).astype(jnp.float32)
        xb = jnp.atleast_2d(x).astype(jnp.bfloat16).astype(jnp.float32)
        h = xb @ self.w1.astype(jnp.float32) + temb
        h = h * jax.nn.sigmoid(h)
        h = (h.astype(jnp.bfloat16).astype(jnp.float32)
             @ self.w2.astype(jnp.float32) + self.b2)
        h = h * jax.nn.sigmoid(h)
        out = (h.astype(jnp.bfloat16).astype(jnp.float32)
               @ self.w3p[:, :D].astype(jnp.float32) + self.b3p[:, :D])
        return out

    # TODO(synk): loss / sampling / KL methods use np.random + torch.distributions;
    # they are orchestration around forward() and are not part of the kernel.


if __name__ == "__main__":
    key = jax.random.PRNGKey(0)
    B, D, T = 8, 32, 100

    model = DiffusionModelPallas(dim=D, n_steps=T, hidden=128, key=key)

    kx, kt = jax.random.split(jax.random.PRNGKey(0), 2)

    # small-batch path (single block, B rounded up to a multiple of 8)
    x = jax.random.normal(kx, (B, D), jnp.float32)
    t = jax.random.randint(kt, (B,), 0, T, jnp.int32)
    out = jax.block_until_ready(model.forward(x, t))
    ref = model._forward_ref(x, t)
    np.testing.assert_allclose(np.asarray(out), np.asarray(ref),
                               rtol=2e-3, atol=2e-3)
    assert out.shape == (B, D)

    # padded-batch path (B=24 -> two 16-row tiles, grid=(2,), batch pad sliced off)
    B1 = 24
    x1 = jax.random.normal(kx, (B1, D), jnp.float32)
    t1 = jax.random.randint(kt, (B1,), 0, T, jnp.int32)
    out1 = jax.block_until_ready(model.forward(x1, t1))
    ref1 = model._forward_ref(x1, t1)
    np.testing.assert_allclose(np.asarray(out1), np.asarray(ref1),
                               rtol=2e-3, atol=2e-3)
    assert out1.shape == (B1, D)

    # large-batch path (two parallel 128-row tiles -> both v7x TensorCores busy)
    B2 = 256
    x2 = jax.random.normal(kx, (B2, D), jnp.float32)
    t2 = jax.random.randint(kt, (B2,), 0, T, jnp.int32)
    out2 = jax.block_until_ready(model.forward(x2, t2))
    ref2 = model._forward_ref(x2, t2)
    np.testing.assert_allclose(np.asarray(out2), np.asarray(ref2),
                               rtol=2e-3, atol=2e-3)
    assert out2.shape == (B2, D)

    print("KERNEL_OK")
</pallas_src>

<mosaic_0001>
module attributes {stable_mosaic.version = 11 : i64} {
  func.func @_net_kernel(%arg0: i32, %arg1: memref<8x32xf32, #tpu.memory_space<vmem>>, %arg2: memref<8x1xi32, #tpu.memory_space<vmem>>, %arg3: memref<128x128xbf16, #tpu.memory_space<vmem>>, %arg4: memref<32x128xbf16, #tpu.memory_space<vmem>>, %arg5: memref<128x128xbf16, #tpu.memory_space<vmem>>, %arg6: memref<1x128xf32, #tpu.memory_space<vmem>>, %arg7: memref<128x128xbf16, #tpu.memory_space<vmem>>, %arg8: memref<1x128xf32, #tpu.memory_space<vmem>>, %arg9: memref<8x128xf32, #tpu.memory_space<vmem>>) attributes {dimension_semantics = [#tpu.dimension_semantics<parallel>], iteration_bounds = array<i64: 1>, scalar_prefetch = 0 : i64, scratch_operands = 0 : i64, tpu.core_type = #tpu.core_type<tc>, window_params = [{transform_indices = @transform_0, window_bounds = array<i64: 8, 32>}, {transform_indices = @transform_1, window_bounds = array<i64: 8, 1>}, {pipeline_mode = #tpu.pipeline_mode<synchronous>, transform_indices = @transform_2, window_bounds = array<i64: 128, 128>}, {pipeline_mode = #tpu.pipeline_mode<synchronous>, transform_indices = @transform_3, window_bounds = array<i64: 32, 128>}, {pipeline_mode = #tpu.pipeline_mode<synchronous>, transform_indices = @transform_4, window_bounds = array<i64: 128, 128>}, {pipeline_mode = #tpu.pipeline_mode<synchronous>, transform_indices = @transform_5, window_bounds = array<i64: 1, 128>}, {pipeline_mode = #tpu.pipeline_mode<synchronous>, transform_indices = @transform_6, window_bounds = array<i64: 128, 128>}, {pipeline_mode = #tpu.pipeline_mode<synchronous>, transform_indices = @transform_7, window_bounds = array<i64: 1, 128>}, {transform_indices = @transform_8, window_bounds = array<i64: 8, 128>}]} {
    %0 = tpu.iota {dimensions = array<i32: 1>} : vector<8x128xi32>
    %c0 = arith.constant 0 : index
    %c0_0 = arith.constant 0 : index
    %1 = vector.load %arg2[%c0, %c0_0] : memref<8x1xi32, #tpu.memory_space<vmem>>, vector<8x1xi32>
    %2 = vector.broadcast %1 : vector<8x1xi32> to vector<8x128xi32>
    %3 = arith.cmpi eq, %0, %2 : vector<8x128xi32>
    %4 = arith.extui %3 : vector<8x128xi1> to vector<8x128xi32>
    %5 = arith.sitofp %4 : vector<8x128xi32> to vector<8x128xf32>
    %6 = arith.truncf %5 : vector<8x128xf32> to vector<8x128xbf16>
    %c0_1 = arith.constant 0 : index
    %c0_2 = arith.constant 0 : index
    %7 = vector.load %arg3[%c0_1, %c0_2] : memref<128x128xbf16, #tpu.memory_space<vmem>>, vector<128x128xbf16>
    %cst = arith.constant dense<0.000000e+00> : vector<8x128xf32>
    %8 = tpu.matmul %6, %7, %cst {dimension_numbers = #tpu.dot_dimension_numbers<[1], [0], [0], [1], [0, 0, 1, 1], [], []>} : vector<8x128xbf16>, vector<128x128xbf16>, vector<8x128xf32> -> vector<8x128xf32>
    %c0_3 = arith.constant 0 : index
    %c0_4 = arith.constant 0 : index
    %9 = vector.load %arg1[%c0_3, %c0_4] : memref<8x32xf32, #tpu.memory_space<vmem>>, vector<8x32xf32>
    %10 = arith.truncf %9 : vector<8x32xf32> to vector<8x32xbf16>
    %c0_5 = arith.constant 0 : index
    %c0_6 = arith.constant 0 : index
    %11 = vector.load %arg4[%c0_5, %c0_6] : memref<32x128xbf16, #tpu.memory_space<vmem>>, vector<32x128xbf16>
    %cst_7 = arith.constant dense<0.000000e+00> : vector<8x128xf32>
    %12 = tpu.matmul %10, %11, %cst_7 {dimension_numbers = #tpu.dot_dimension_numbers<[1], [0], [0], [1], [0, 0, 1, 1], [], []>} : vector<8x32xbf16>, vector<32x128xbf16>, vector<8x128xf32> -> vector<8x128xf32>
    %13 = arith.addf %12, %8 : vector<8x128xf32>
    %14 = arith.negf %13 : vector<8x128xf32>
    %15 = math.exp %14 : vector<8x128xf32>
    %cst_8 = arith.constant 1.000000e+00 : f32
    %16 = vector.broadcast %cst_8 : f32 to vector<8x128xf32>
    %17 = arith.addf %16, %15 : vector<8x128xf32>
    %18 = arith.divf %16, %17 : vector<8x128xf32>
    %19 = arith.mulf %13, %18 : vector<8x128xf32>
    %20 = arith.truncf %19 : vector<8x128xf32> to vector<8x128xbf16>
    %c0_9 = arith.constant 0 : index
    %c0_10 = arith.constant 0 : index
    %21 = vector.load %arg5[%c0_9, %c0_10] : memref<128x128xbf16, #tpu.memory_space<vmem>>, vector<128x128xbf16>
    %cst_11 = arith.constant dense<0.000000e+00> : vector<8x128xf32>
    %22 = tpu.matmul %20, %21, %cst_11 {dimension_numbers = #tpu.dot_dimension_numbers<[1], [0], [0], [1], [0, 0, 1, 1], [], []>} : vector<8x128xbf16>, vector<128x128xbf16>, vector<8x128xf32> -> vector<8x128xf32>
    %c0_12 = arith.constant 0 : index
    %c0_13 = arith.constant 0 : index
    %23 = vector.load %arg6[%c0_12, %c0_13] : memref<1x128xf32, #tpu.memory_space<vmem>>, vector<1x128xf32>
    %24 = vector.broadcast %23 : vector<1x128xf32> to vector<8x128xf32>
    %25 = arith.addf %22, %24 : vector<8x128xf32>
    %26 = arith.negf %25 : vector<8x128xf32>
    %27 = math.exp %26 : vector<8x128xf32>
    %cst_14 = arith.constant 1.000000e+00 : f32
    %28 = vector.broadcast %cst_14 : f32 to vector<8x128xf32>
    %29 = arith.addf %28, %27 : vector<8x128xf32>
    %30 = arith.divf %28, %29 : vector<8x128xf32>
    %31 = arith.mulf %25, %30 : vector<8x128xf32>
    %32 = arith.truncf %31 : vector<8x128xf32> to vector<8x128xbf16>
    %c0_15 = arith.constant 0 : index
    %c0_16 = arith.constant 0 : index
    %33 = vector.load %arg7[%c0_15, %c0_16] : memref<128x128xbf16, #tpu.memory_space<vmem>>, vector<128x128xbf16>
    %cst_17 = arith.constant dense<0.000000e+00> : vector<8x128xf32>
    %34 = tpu.matmul %32, %33, %cst_17 {dimension_numbers = #tpu.dot_dimension_numbers<[1], [0], [0], [1], [0, 0, 1, 1], [], []>} : vector<8x128xbf16>, vector<128x128xbf16>, vector<8x128xf32> -> vector<8x128xf32>
    %c0_18 = arith.constant 0 : index
    %c0_19 = arith.constant 0 : index
    %35 = vector.load %arg8[%c0_18, %c0_19] : memref<1x128xf32, #tpu.memory_space<vmem>>, vector<1x128xf32>
    %36 = vector.broadcast %35 : vector<1x128xf32> to vector<8x128xf32>
    %37 = arith.addf %34, %36 : vector<8x128xf32>
    %c0_20 = arith.constant 0 : index
    %c0_21 = arith.constant 0 : index
    %38 = vector.load %arg9[%c0_20, %c0_21] : memref<8x128xf32, #tpu.memory_space<vmem>>, vector<8x128xf32>
    tpu.vector_store %arg9[%c0_20, %c0_21], %37 {strides = array<i32>} : memref<8x128xf32, #tpu.memory_space<vmem>>, vector<8x128xf32>,
    return
  }
  func.func @transform_0(%arg0: i32) -> (i32, i32) {
    %c0_i32 = arith.constant 0 : i32
    %c0_i32_0 = arith.constant 0 : i32
    return %arg0, %c0_i32 : i32, i32
  }
  func.func @transform_1(%arg0: i32) -> (i32, i32) {
    %c0_i32 = arith.constant 0 : i32
    %c0_i32_0 = arith.constant 0 : i32
    return %arg0, %c0_i32 : i32, i32
  }
  func.func @transform_2(%arg0: i32) -> (i32, i32) {
    %c0_i32 = arith.constant 0 : i32
    %c0_i32_0 = arith.constant 0 : i32
    %c0_i32_1 = arith.constant 0 : i32
    return %c0_i32, %c0_i32_0 : i32, i32
  }
  func.func @transform_3(%arg0: i32) -> (i32, i32) {
    %c0_i32 = arith.constant 0 : i32
    %c0_i32_0 = arith.constant 0 : i32
    %c0_i32_1 = arith.constant 0 : i32
    return %c0_i32, %c0_i32_0 : i32, i32
  }
  func.func @transform_4(%arg0: i32) -> (i32, i32) {
    %c0_i32 = arith.constant 0 : i32
    %c0_i32_0 = arith.constant 0 : i32
    %c0_i32_1 = arith.constant 0 : i32
    return %c0_i32, %c0_i32_0 : i32, i32
  }
  func.func @transform_5(%arg0: i32) -> (i32, i32) {
    %c0_i32 = arith.constant 0 : i32
    %c0_i32_0 = arith.constant 0 : i32
    %c0_i32_1 = arith.constant 0 : i32
    return %c0_i32, %c0_i32_0 : i32, i32
  }
  func.func @transform_6(%arg0: i32) -> (i32, i32) {
    %c0_i32 = arith.constant 0 : i32
    %c0_i32_0 = arith.constant 0 : i32
    %c0_i32_1 = arith.constant 0 : i32
    return %c0_i32, %c0_i32_0 : i32, i32
  }
  func.func @transform_7(%arg0: i32) -> (i32, i32) {
    %c0_i32 = arith.constant 0 : i32
    %c0_i32_0 = arith.constant 0 : i32
    %c0_i32_1 = arith.constant 0 : i32
    return %c0_i32, %c0_i32_0 : i32, i32
  }
  func.func @transform_8(%arg0: i32) -> (i32, i32) {
    %c0_i32 = arith.constant 0 : i32
    %c0_i32_0 = arith.constant 0 : i32
    return %arg0, %c0_i32 : i32, i32
  }
}

</mosaic_0001>

<bundles_post_ra>
// kernel: _forward_impl.1
= control target key start
LH: loop header
LB: loop body
LE: loop exit
PB: predicated region body
PF: predicated region fallthrough
CT: control target
= control target key end

     0   :  { %13 = vsyncpa [#allocation3], 0  ;;  %s949_s0 = inlined_call_operand.vmem [shape: f32[8,32], index: 0, kind: input, shape index: {}]   ;;  %s950_s1 = inlined_call_operand.vmem [shape: s32[8,1], index: 1, kind: input, shape index: {}]   ;;  %s951_s2 = inlined_call_operand.hbm [shape: bf16[128,128], index: 2, kind: input, shape index: {}]   ;;  %s952_s3 = inlined_call_operand.vmem [shape: bf16[32,128], index: 3, kind: input, shape index: {}]   ;;  %s953_s4 = inlined_call_operand.hbm [shape: bf16[128,128], index: 4, kind: input, shape index: {}]   ;;  %s954_s5 = inlined_call_operand.vmem [shape: f32[1,128], index: 5, kind: input, shape index: {}]   ;;  %s955_s6 = inlined_call_operand.hbm [shape: bf16[128,128], index: 6, kind: input, shape index: {}]   ;;  %s956_s7 = inlined_call_operand.vmem [shape: f32[1,128], index: 7, kind: input, shape index: {}]   ;;  %s957_s8 = inlined_call_operand.hbm [shape: f32[8,128], index: 8, kind: output, shape index: {}]  }
   0x1   :  { %14 = vsyncpa [#allocation6], 0 }
   0x2   :  { %15 = vsyncpa [#allocation4], 0  ;;  %s778_s27 = smov [#allocation5]   ;;  %s779_s29 = smov [#allocation2]  }
   0x3   :  { %s39_s28 = sshll.u32 %s778_s27, 4  ;;  %s25_s30 = sshll.u32 %s779_s29, 4  ;;  %s40_s28 = int_to_ptr.vmem [resolvable:$true] %s39_s28  ;;  %s833_s30 = int_to_ptr.vmem [resolvable:$true] %s25_s30 }
   0x4   :  { %s684_s11 = scalar_lea.hbm %s953_s4, 1024 }
   0x5   :  { %p685_p0 = scmp.ne.s32.totalorder %s953_s4, %s684_s11  ;;  %p688_p1 = scmp.lt.u32.totalorder %s684_s11, %s953_s4 }
   0x7   :  { %p690_p2 = pnand %p688_p1, %p685_p0 }
   0x9   :  { %693 = shalt.err (!%p690_p2)
}
   0xa   :  { %s694_s16 = scalar_lea.vmem %s40_s28, 1024  ;;  %p699_p4 = scmp.lt.s32.totalorder %s40_s28, %s40_s28 }
   0xb   :  { %p695_p3 = scmp.ne.s32.totalorder %s40_s28, %s694_s16  ;;  %p700_p5 = scmp.lt.s32.totalorder %s694_s16, %s694_s16 }
   0xd   :  { %p701_p6 = por %p700_p5, %p699_p4 }
   0xf   :  { %p702_p7 = pnand %p701_p6, %p695_p3 }
  0x11   :  { %705 = shalt.err (!%p702_p7)
}
  0x12   :  { %s780_s17 = smov 64   ;;  %s781_s18 = smov 4  }
  0x13   :  { %45 = dma.hbm_to_vmem [thread:$0]  %s953_s4, 1024, %s40_s28, [#allocation6], %s780_s17, %s780_s17, %s781_s18  }
  0x14   :  { %s706_s23 = scalar_lea.hbm %s951_s2, 1024 }
  0x15   :  { %p707_p8 = scmp.ne.s32.totalorder %s951_s2, %s706_s23  ;;  %p710_p9 = scmp.lt.u32.totalorder %s706_s23, %s951_s2 }
  0x17   :  { %p712_p10 = pnand %p710_p9, %p707_p8 }
  0x19   :  { %715 = shalt.err (!%p712_p10)
}
  0x1a   :  { %s716_s29 = scalar_lea.vmem %s833_s30, 1024  ;;  %p721_p12 = scmp.lt.s32.totalorder %s833_s30, %s833_s30 }
  0x1b   :  { %p717_p11 = scmp.ne.s32.totalorder %s833_s30, %s716_s29  ;;  %p722_p13 = scmp.lt.s32.totalorder %s716_s29, %s716_s29 }
  0x1d   :  { %p723_p0 = por %p722_p13, %p721_p12 }
  0x1f   :  { %p724_p1 = pnand %p723_p0, %p717_p11 }
  0x21   :  { %727 = shalt.err (!%p724_p1)
}
  0x22   :  { %31 = dma.hbm_to_vmem [thread:$0]  %s951_s2, 1024, %s833_s30, [#allocation3], %s780_s17, %s780_s17, %s781_s18  }
  0x23   :  { %s782_s9 = smov [#allocation7]   ;;  %s728_s13 = scalar_lea.hbm %s955_s6, 1024 }
  0x24   :  { %s53_s10 = sshll.u32 %s782_s9, 4  ;;  %p729_p2 = scmp.ne.s32.totalorder %s955_s6, %s728_s13  ;;  %s54_s10 = int_to_ptr.vmem [resolvable:$true] %s53_s10 }
  0x25   :  { %p732_p3 = scmp.lt.u32.totalorder %s728_s13, %s955_s6 }
  0x27   :  { %p734_p4 = pnand %p732_p3, %p729_p2 }
  0x29   :  { %737 = shalt.err (!%p734_p4)
}
  0x2a   :  { %s738_s20 = scalar_lea.vmem %s54_s10, 1024  ;;  %p743_p6 = scmp.lt.s32.totalorder %s54_s10, %s54_s10 }
  0x2b   :  { %p739_p5 = scmp.ne.s32.totalorder %s54_s10, %s738_s20  ;;  %p744_p7 = scmp.lt.s32.totalorder %s738_s20, %s738_s20 }
  0x2d   :  { %p745_p8 = por %p744_p7, %p743_p6 }
  0x2f   :  { %p746_p9 = pnand %p745_p8, %p739_p5 }
  0x31   :  { %749 = shalt.err (!%p746_p9)
}
  0x32   :  { %59 = dma.hbm_to_vmem [thread:$0]  %s955_s6, 1024, %s54_s10, [#allocation6], %s780_s17, %s780_s17, %s781_s18  }
  0x33   :  { %772 = dma.done.wait [#allocation3], 1024  }
  0x34   :  { %773 = vsyncadd [#allocation3], 4294966272 }
  0x35   :  { %774 = dma.done.wait [#allocation6], 2048  }
  0x36   :  { %775 = vsyncadd [#allocation6], 4294965248  ;;  %v783_v0 = vmov 0   ;;  %v784_v1 = vmov 0.0   ;;  %v74_v2 = vld [vmem:[%s950_s1] sm:$0xff]  ;;  %vm785_vm0 = vmmov 0   ;;  %v72_v11 = vlaneseq }
  0x37   :  { %649 = vset.pattern.permute.xlu0 %v783_v0  ;;  %567 = vmatprep.subr.bf16.mxu0 %v784_v1  ;;  %v650_v3 = vld [vmem:[#allocation2] sm:$0xff]   ;;  %v651_v4 = vld [vmem:[#allocation2 + $0x8] sm:$0xff]   ;;  %v652_v5 = vld [vmem:[#allocation2 + $0x10] sm:$0xff]   ;;  %v786_v15 = vmov 1.0|1.0   ;;  %vm204_vm3 = vcmask 261120  }
  0x38   :  { %595 = vmatprep.subr.bf16.mxu1 %v784_v1  ;;  %76 = vperm.xlu0 %649, %v74_v2   ;;  %v653_v6 = vld [vmem:[#allocation2 + $0x18] sm:$0xff]   ;;  %v654_v7 = vld [vmem:[#allocation2 + $0x20] sm:$0xff]   ;;  %v655_v8 = vld [vmem:[#allocation2 + $0x28] sm:$0xff]   ;;  %v73_v12 = vand.u32 127, %v72_v11  ;;  %s787_s27 = smov [#allocation8]  }
  0x39   :  { %583 = vmatprep.mubr.msk.bf16.mxu0 %vm785_vm0, %v784_v1  ;;  %611 = vmatprep.mubr.msk.bf16.mxu1 %vm785_vm0, %v784_v1  ;;  %v656_v9 = vld [vmem:[#allocation2 + $0x30] sm:$0xff]   ;;  %v657_v10 = vld [vmem:[#allocation2 + $0x38] sm:$0xff]   ;;  %v658_v14 = vld [vmem:[%s952_s3] sm:$0xff]  }
  0x3a   :  { %568 = vmatpush3.bf16.msra.mxu0 %v650_v3  ;;  %v659_v16 = vld [vmem:[%s952_s3 + $0x8] sm:$0xff]   ;;  %v186_v17 = vld [vmem:[%s949_s0] sm:$0xff]  ;;  %v662_v21 = vld [vmem:[#allocation5 + $0x10] sm:$0xff]  }
  0x3b   :  { %569 = vmatprep.subr.bf16.mxu0 %v784_v1  ;;  %v187_v18 = vpack.c.bf16 %v186_v17, %v186_v17  ;;  %v660_v19 = vld [vmem:[#allocation5] sm:$0xff]   ;;  %v661_v20 = vld [vmem:[#allocation5 + $0x8] sm:$0xff]   ;;  %v663_v22 = vld [vmem:[#allocation5 + $0x18] sm:$0xff]  }
  0x3c   :  { %596 = vmatpush3.bf16.msra.mxu1 %v660_v19  ;;  %v664_v23 = vld [vmem:[#allocation5 + $0x20] sm:$0xff]   ;;  %v665_v24 = vld [vmem:[#allocation5 + $0x28] sm:$0xff]   ;;  %v666_v25 = vld [vmem:[#allocation5 + $0x30] sm:$0xff]  }
  0x3d   :  { %597 = vmatprep.subr.bf16.mxu1 %v784_v1  ;;  %v667_v26 = vld [vmem:[#allocation5 + $0x38] sm:$0xff]   ;;  %v668_v37 = vld [vmem:[#allocation7] sm:$0xff]   ;;  %v669_v38 = vld [vmem:[#allocation7 + $0x8] sm:$0xff]  }
  0x3e   :  { %570 = vmatpush3.bf16.msra.mxu0 %v651_v4  ;;  %v670_v39 = vld [vmem:[#allocation7 + $0x10] sm:$0xff]   ;;  %v671_v40 = vld [vmem:[#allocation7 + $0x18] sm:$0xff]   ;;  %v672_v41 = vld [vmem:[#allocation7 + $0x20] sm:$0xff]  }
  0x3f   :  { %571 = vmatprep.subr.bf16.mxu0 %v784_v1  ;;  %v673_v42 = vld [vmem:[#allocation7 + $0x28] sm:$0xff]   ;;  %v674_v43 = vld [vmem:[#allocation7 + $0x30] sm:$0xff]   ;;  %v675_v44 = vld [vmem:[#allocation7 + $0x38] sm:$0xff]  }
  0x40   :  { %598 = vmatpush3.bf16.msra.mxu1 %v661_v20  ;;  %v518_v45 = vld [vmem:[%s954_s5] ss:$0 sm:$0xff]  ;;  %s493_s5 = sshll.u32 %s787_s27, 4  ;;  %s494_s5 = int_to_ptr.vmem [resolvable:$true] %s493_s5 }
  0x41   :  { %599 = vmatprep.subr.bf16.mxu1 %v784_v1  ;;  %v528_v57 = vld [vmem:[%s956_s7] ss:$0 sm:$0xff]  ;;  %s750_s29 = scalar_lea.vmem %s494_s5, 128  ;;  %p755_p11 = scmp.lt.s32.totalorder %s494_s5, %s494_s5 }
  0x42   :  { %572 = vmatpush3.bf16.msra.mxu0 %v652_v5  ;;  %p751_p10 = scmp.ne.s32.totalorder %s494_s5, %s750_s29  ;;  %p756_p12 = scmp.lt.s32.totalorder %s750_s29, %s750_s29 }
  0x43   :  { %573 = vmatprep.subr.bf16.mxu0 %v784_v1 }
  0x44   :  { %600 = vmatpush3.bf16.msra.mxu1 %v662_v21  ;;  %p757_p13 = por %p756_p12, %p755_p11 }
  0x45   :  { %601 = vmatprep.subr.bf16.mxu1 %v784_v1 }
  0x46   :  { %574 = vmatpush3.bf16.msra.mxu0 %v653_v6  ;;  %p758_p0 = pnand %p757_p13, %p751_p10 }
  0x47   :  { %575 = vmatprep.subr.bf16.mxu0 %v784_v1 }
  0x48   :  { %602 = vmatpush3.bf16.msra.mxu1 %v663_v22 }
  0x49   :  { %603 = vmatprep.subr.bf16.mxu1 %v784_v1 }
  0x4a   :  { %576 = vmatpush3.bf16.msra.mxu0 %v654_v7 }
  0x4b   :  { %577 = vmatprep.subr.bf16.mxu0 %v784_v1 }
  0x4c   :  { %604 = vmatpush3.bf16.msra.mxu1 %v664_v23 }
  0x4d   :  { %605 = vmatprep.subr.bf16.mxu1 %v784_v1 }
  0x4e   :  { %578 = vmatpush3.bf16.msra.mxu0 %v655_v8 }
  0x4f   :  { %579 = vmatprep.subr.bf16.mxu0 %v784_v1 }
  0x50   :  { %606 = vmatpush3.bf16.msra.mxu1 %v665_v24 }
  0x51   :  { %607 = vmatprep.subr.bf16.mxu1 %v784_v1 }
  0x52   :  { %580 = vmatpush3.bf16.msra.mxu0 %v656_v9 }
  0x53   :  { %581 = vmatprep.subr.bf16.mxu0 %v784_v1 }
  0x54   :  { %608 = vmatpush3.bf16.msra.mxu1 %v666_v25 }
  0x55   :  { %609 = vmatprep.subr.bf16.mxu1 %v784_v1 }
  0x56   :  { %582 = vmatpush3.bf16.msra.mxu0 %v657_v10 }
  0x57   :  { %587 = vmatprep.subr.bf16.mxu0 %v784_v1 }
  0x58   :  { %610 = vmatpush3.bf16.msra.mxu1 %v667_v26 }
  0x59   :  { %615 = vmatprep.subr.bf16.mxu1 %v784_v1 }
  0xb7   :  { %v77_v13 = vpop.permute.xlu0 %76 }
  0xb8   :  { %vm78_vm1 = vcmp.eq.s32.totalorder %v73_v12, %v77_v13 }
  0xb9   :  { %vm512_vm2 = vmpackc.low %vm78_vm1, %vm78_vm1 }
  0xba   :  { %584 = vmatmul.mubr.msk.bf16.vlgmr.msra.gmra.mrb[0].mxu0 %vm512_vm2, %v786_v15 }
  0xbb   :  { %588 = vmatpush3.bf16.msra.mxu0 %v658_v14  ;;  %591 = vmatprep.mubr.msk.bf16.mxu0 %vm785_vm0, %v784_v1 }
  0xbc   :  { %589 = vmatprep.subr.bf16.mxu0 %v784_v1 }
  0xbf   :  { %590 = vmatpush3.bf16.msra.mxu0 %v659_v16 }
  0xc6   :  { %592 = vmatmul.mubr.msk.bf16.vlgmr.msra.gmra.mrb[0].mxu0 %vm204_vm3, %v187_v18 }
 0x199   :  { %v242_v27 = vpop.f32.mrb[0].mxu0 }
 0x19a   :  { %v517_v28 = vmul.f32 -1.442695, %v242_v27  ;;  %v593_v29 = vpop.f32.mrb[1].mxu0 }
 0x19b   :  { %v245_v30 = vpop.f32.mrb[2].mxu0 }
 0x19c   :  { %676 = vpow2.f32 %v517_v28  ;;  %v594_v31 = vpop.f32.mrb[3].mxu0 }
 0x1a6   :  { %v677_v32 = vpop.eup %676 }
 0x1a7   :  { %v251_v33 = vadd.f32 1.0, %v677_v32 }
 0x1a9   :  { %678 = vrcp.f32 %v251_v33 }
 0x1b3   :  { %v679_v34 = vpop.eup %678 }
 0x1b4   :  { %v254_v35 = vmul.f32 %v679_v34, %v242_v27 }
 0x1b6   :  { %v255_v36 = vpack.c.bf16 %v254_v35, %v254_v35 }
 0x1b8   :  { %612 = vmatmul.mubr.bf16.vlgmr.msra.gmra.mrb[0].mxu1 %v255_v36 }
 0x1b9   :  { %631 = vmatprep.mubr.msk.bf16.mxu1 %vm785_vm0, %v784_v1  ;;  %616 = vmatpush3.bf16.msra.mxu1 %v668_v37 }
 0x1ba   :  { %617 = vmatprep.subr.bf16.mxu1 %v784_v1 }
 0x1bd   :  { %618 = vmatpush3.bf16.msra.mxu1 %v669_v38 }
 0x1be   :  { %619 = vmatprep.subr.bf16.mxu1 %v784_v1 }
 0x1c1   :  { %620 = vmatpush3.bf16.msra.mxu1 %v670_v39 }
 0x1c2   :  { %621 = vmatprep.subr.bf16.mxu1 %v784_v1 }
 0x1c5   :  { %622 = vmatpush3.bf16.msra.mxu1 %v671_v40 }
 0x1c6   :  { %623 = vmatprep.subr.bf16.mxu1 %v784_v1 }
 0x1c9   :  { %624 = vmatpush3.bf16.msra.mxu1 %v672_v41 }
 0x1ca   :  { %625 = vmatprep.subr.bf16.mxu1 %v784_v1 }
 0x1cd   :  { %626 = vmatpush3.bf16.msra.mxu1 %v673_v42 }
 0x1ce   :  { %627 = vmatprep.subr.bf16.mxu1 %v784_v1 }
 0x1d1   :  { %628 = vmatpush3.bf16.msra.mxu1 %v674_v43 }
 0x1d2   :  { %629 = vmatprep.subr.bf16.mxu1 %v784_v1 }
 0x1d5   :  { %630 = vmatpush3.bf16.msra.mxu1 %v675_v44 }
 0x28b   :  { %v361_v46 = vpop.f32.mrb[0].mxu1 }
 0x28c   :  { %v362_v47 = vadd.f32 %v518_v45, %v361_v46  ;;  %v613_v48 = vpop.f32.mrb[1].mxu1 }
 0x28d   :  { %v364_v49 = vpop.f32.mrb[2].mxu1 }
 0x28e   :  { %v527_v50 = vmul.f32 -1.442695, %v362_v47  ;;  %v614_v51 = vpop.f32.mrb[3].mxu1 }
 0x290   :  { %680 = vpow2.f32 %v527_v50 }
 0x29a   :  { %v681_v52 = vpop.eup %680 }
 0x29b   :  { %v370_v53 = vadd.f32 1.0, %v681_v52 }
 0x29d   :  { %682 = vrcp.f32 %v370_v53 }
 0x2a7   :  { %v683_v54 = vpop.eup %682 }
 0x2a8   :  { %v373_v55 = vmul.f32 %v683_v54, %v362_v47 }
 0x2aa   :  { %v374_v56 = vpack.c.bf16 %v373_v55, %v373_v55 }
 0x2ac   :  { %632 = vmatmul.mubr.bf16.vlgmr.msra.gmra.mrb[4].mxu1 %v374_v56 }
 0x37f   :  { %v480_v58 = vpop.f32.mrb[4].mxu1 }
 0x380   :  { %v481_v59 = vadd.f32 %v528_v57, %v480_v58  ;;  %v633_v60 = vpop.f32.mrb[5].mxu1 }
 0x381   :  { %v483_v61 = vpop.f32.mrb[6].mxu1 }
 0x382   :  { %486 = vst [vmem:[#allocation8] sm:$0xff] %v481_v59  ;;  %v634_v62 = vpop.f32.mrb[7].mxu1 }
 0x383   :  { %761 = shalt.err (!%p758_p0)
}
 0x384   :  { %s762_s7 = scalar_lea.hbm %s957_s8, 128 }
 0x385   :  { %p763_p1 = scmp.ne.s32.totalorder %s957_s8, %s762_s7  ;;  %p766_p2 = scmp.lt.u32.totalorder %s762_s7, %s957_s8 }
 0x387   :  { %p768_p3 = pnand %p766_p2, %p763_p1 }
 0x389   :  { %771 = shalt.err (!%p768_p3)
}
 0x38a   :  { %496 = dma.vmem_to_hbm [thread:$0]  %s494_s5, 128, %s957_s8, [#allocation4]  }
 0x38b   :  { %776 = dma.done.wait [#allocation4], 128  }
 0x38c   :  { %777 = vsyncadd [#allocation4], 4294967168 }
 0x38d   :  { %500 = vsyncpa [#allocation3], 1 }
 0x38e   :  { %501 = vsyncpa [#allocation6], 1 }
 0x38f   :  { %502 = vsyncpa [#allocation4], 1 }

</bundles_post_ra>
